<compile_context>
chip_gen: v5e
topology: v5e:2x2
jax: 0.10.0
libtpu: 0.0.40
codegen_flags: <defaults>
</compile_context>

<pallas_src>
import functools
import time

import jax
import jax.numpy as jnp
from jax.experimental import pallas as pl
from jax.experimental.pallas import tpu as pltpu

_LANE = 128
_SUBLANE = 8
_Z_PAD = 128              # encoder feature dim padded to one lane width
_NC_PAD = 128             # number of classes padded to one lane width
_NEG_BIG = -1e9           # bias for padded (non-existent) classes
_WE_RESIDENT_MAX_DPAD = 16 * 1024   # resident bf16 We <= 4 MiB per pipeline buffer


def _round_up(n, m):
    return ((n + m - 1) // m) * m


def _choose_tiles(batch, din, *, tb_target=256, tk_target=2048):
    """Pick batch / contraction tiles.

    * batch <= tb_target: a single batch tile (block dim == full array dim); tiny
      batches round up to one sublane (8) so vreg tiles are well-formed.
    * batch  > tb_target: tile capped at ceil(batch/2) so there are >= 2 batch tiles,
      keeping the "parallel" axis splittable across v7x's two TensorCores.
    * Din padded to a lane multiple; single k step if it fits tk_target, else
      tk_target-wide reduction tiles.
    """
    if batch <= tb_target:
        tb = _round_up(batch, _SUBLANE) if batch < _SUBLANE else batch
        b_pad = tb
    else:
        tb = min(tb_target, _round_up(-(-batch // 2), _SUBLANE))
        b_pad = _round_up(batch, tb)

    d_lane = _round_up(din, _LANE)
    if d_lane <= tk_target:
        tk, d_pad = d_lane, d_lane
    else:
        tk, d_pad = tk_target, _round_up(din, tk_target)
    return tb, b_pad, tk, d_pad


def _online_eval_kernel(x_ref, we_ref, be_ref, wc_ref, bc_ref, y_ref,
                        stats_ref, acc_ref, *, batch_size, tb, tk, we_resident):
    """Grid = (batch tiles, Din reduction tiles).

    x_ref  : [tb, tk]                    f32   flattened-input tile (cast to bf16 here)
    we_ref : [d_pad, Z_PAD] or [tk, Z_PAD] bf16 encoder weight (resident / k-tiled)
    be_ref : [1, Z_PAD]                  f32   encoder bias (zero on padded z columns)
    wc_ref : [Z_PAD, NC_PAD]             bf16  classifier weight (zero on padded rows/cols)
    bc_ref : [1, NC_PAD]                 f32   classifier bias (-1e9 on padded classes)
    y_ref  : [tb, 1]                     int32 labels
    stats_ref : [1, 8, 128]              f32   sublane 0 = sum(loss), 1 = sum(correct)
    acc_ref   : [tb, Z_PAD]              f32   z accumulator (VMEM scratch)
    """
    i = pl.program_id(0)
    k = pl.program_id(1)
    nk = pl.num_programs(1)

    # f32 tile from HBM, bf16 cast on the VPU (free slot under the HBM bound).
    xb = x_ref[...].astype(jnp.bfloat16)
    if we_resident:
        k0 = pl.multiple_of(k * tk, _LANE)          # tile-aligned sublane slice
        w_k = we_ref[pl.ds(k0, tk), :]
    else:
        w_k = we_ref[...]
    part = jnp.dot(xb, w_k, preferred_element_type=jnp.float32)

    @pl.when(k == 0)
    def _():
        acc_ref[...] = part + be_ref[...]           # init with 1st partial + encoder bias

    @pl.when(k != 0)
    def _():
        acc_ref[...] += part

    # Epilogue only on the last reduction step: classifier, CE, accuracy, reduce.
    @pl.when(k == nk - 1)
    def _():
        z = acc_ref[...]                                              # [tb, Z_PAD] f32
        logits = jnp.dot(z.astype(jnp.bfloat16), wc_ref[...],
                         preferred_element_type=jnp.float32) + bc_ref[...]
        tb_, ncp = logits.shape

        # numerically-stable cross entropy, kept in f32 (v5e has no bf16 VPU/EUP)
        m = jnp.max(logits, axis=-1, keepdims=True)
        lse = m + jnp.log(jnp.sum(jnp.exp(logits - m), axis=-1, keepdims=True))

        y = y_ref[...]                                                # [tb, 1] int32
        cls = jax.lax.broadcasted_iota(jnp.int32, (tb_, ncp), 1)
        logit_y = jnp.sum(jnp.where(cls == y, logits, 0.0), axis=-1, keepdims=True)
        per_loss = lse - logit_y                                      # [tb, 1]

        # argmax with lowest-index tie-break; padded classes sit at -1e9, never picked
        pred = jnp.min(jnp.where(logits == m, cls, ncp), axis=-1, keepdims=True)
        per_correct = (pred == y).astype(jnp.float32)                 # [tb, 1]

        # mask batch-padding rows, reduce this tile to two scalars
        row = jax.lax.broadcasted_iota(jnp.int32, (tb_, 1), 0) + i * tb
        valid = (row < batch_size).astype(jnp.float32)
        sum_loss = jnp.sum(per_loss * valid)
        sum_correct = jnp.sum(per_correct * valid)

        # single lane-dense (8,128) store: sublane 0 <- sum_loss, sublane 1 <- sum_correct
        rid = jax.lax.broadcasted_iota(jnp.int32, (_SUBLANE, _LANE), 0)
        stats_ref[...] = jnp.where(
            rid == 0, sum_loss, jnp.where(rid == 1, sum_correct, 0.0))[None]


def build_online_evaluator(in_features, z_dim, n_classes, batch_size,
                           *, tb_target=256, tk_target=2048):
    """Returns (prepare_params, forward).  prepare_params pads/casts weights once;
    forward is a jitted (x, y, padded_params) -> (mean_loss, mean_acc)."""
    assert z_dim <= _Z_PAD and n_classes <= _NC_PAD
    assert tk_target % _LANE == 0
    tb, b_pad, tk, d_pad = _choose_tiles(batch_size, in_features,
                                         tb_target=tb_target, tk_target=tk_target)
    grid = (b_pad // tb, d_pad // tk)
    we_resident = d_pad <= _WE_RESIDENT_MAX_DPAD

    def prepare_params(params):
        we = jnp.zeros((d_pad, _Z_PAD), jnp.bfloat16)
        we = we.at[:in_features, :z_dim].set(params["w_enc"].astype(jnp.bfloat16))
        be = jnp.zeros((1, _Z_PAD), jnp.float32)
        be = be.at[:, :z_dim].set(params["b_enc"].reshape(1, z_dim).astype(jnp.float32))
        wc = jnp.zeros((_Z_PAD, _NC_PAD), jnp.bfloat16)
        wc = wc.at[:z_dim, :n_classes].set(params["w_clf"].astype(jnp.bfloat16))
        bc = jnp.full((1, _NC_PAD), _NEG_BIG, jnp.float32)
        bc = bc.at[:, :n_classes].set(params["b_clf"].reshape(1, n_classes).astype(jnp.float32))
        return dict(w_enc=we, b_enc=be, w_clf=wc, b_clf=bc)

    kernel = functools.partial(_online_eval_kernel, batch_size=batch_size,
                               tb=tb, tk=tk, we_resident=we_resident)

    # We: resident (constant index_map, full block, sliced in-kernel) when it fits;
    # k-tiled fallback for very large Din.
    we_spec = (pl.BlockSpec((d_pad, _Z_PAD), lambda i, k: (0, 0)) if we_resident
               else pl.BlockSpec((tk, _Z_PAD), lambda i, k: (k, 0)))

    call = pl.pallas_call(
        kernel,
        out_shape=jax.ShapeDtypeStruct((grid[0], _SUBLANE, _LANE), jnp.float32),
        grid=grid,
        in_specs=[
            pl.BlockSpec((tb, tk), lambda i, k: (i, k)),             # x tile (f32)
            we_spec,                                                 # We
            pl.BlockSpec((1, _Z_PAD), lambda i, k: (0, 0)),          # be
            pl.BlockSpec((_Z_PAD, _NC_PAD), lambda i, k: (0, 0)),    # Wc
            pl.BlockSpec((1, _NC_PAD), lambda i, k: (0, 0)),         # bc
            pl.BlockSpec((tb, 1), lambda i, k: (i, 0)),              # y
        ],
        out_specs=pl.BlockSpec((1, _SUBLANE, _LANE), lambda i, k: (i, 0, 0)),
        scratch_shapes=[pltpu.VMEM((tb, _Z_PAD), jnp.float32)],
        compiler_params=pltpu.CompilerParams(
            dimension_semantics=("parallel", "arbitrary"),
            vmem_limit_bytes=32 * 1024 * 1024,       # safe on v5e/v6e (128 MiB) & v7x (64 MiB)
        ),
    )

    @jax.jit
    def forward(x, y, padded_params):
        b = x.shape[0]
        assert b == batch_size
        x_flat = x.reshape(b, -1)                 # free reshape; stays f32, cast in-kernel
        if (b_pad, d_pad) != (b, in_features):    # pad only when tiles don't already align
            x_flat = jnp.pad(x_flat, ((0, b_pad - b), (0, d_pad - in_features)))
        y2d = y.reshape(b, 1).astype(jnp.int32)
        if b_pad != b:
            y2d = jnp.pad(y2d, ((0, b_pad - b), (0, 0)))
        stats = call(x_flat, padded_params["w_enc"], padded_params["b_enc"],
                     padded_params["w_clf"], padded_params["b_clf"], y2d)
        loss = jnp.sum(stats[:, 0, 0]) / batch_size
        acc = jnp.sum(stats[:, 1, 0]) / batch_size
        return loss, acc

    return prepare_params, forward


def online_evaluator_forward(forward_fn, x, y, padded_params):
    """Mimics OnlineEvaluator.forward((x, y), encoder): returns (loss, logs).
    Call forward_fn once beforehand (warm-up) so inference_time measures execution
    of the compiled kernel, not trace + compile (host wall-clock glue only)."""
    t0 = time.perf_counter()
    loss, acc = forward_fn(x, y, padded_params)
    jax.block_until_ready((loss, acc))
    inference_time = time.perf_counter() - t0
    logs = dict(online_loss=loss, inference_time=inference_time,
                online_acc=acc, online_err=1.0 - acc)
    return loss, logs


def init_params(key, in_features, z_dim, out_dim):
    """Deterministic init mimicking nn.Linear default (uniform +/- 1/sqrt(fan_in))."""
    k1, k2, k3, k4 = jax.random.split(key, 4)
    b_enc_bound = 1.0 / jnp.sqrt(in_features)
    b_clf_bound = 1.0 / jnp.sqrt(z_dim)
    return {
        "w_enc": jax.random.uniform(k1, (in_features, z_dim), jnp.float32,
                                    -b_enc_bound, b_enc_bound),
        "b_enc": jax.random.uniform(k2, (1, z_dim), jnp.float32,
                                    -b_enc_bound, b_enc_bound),
        "w_clf": jax.random.uniform(k3, (z_dim, out_dim), jnp.float32,
                                    -b_clf_bound, b_clf_bound),
        "b_clf": jax.random.uniform(k4, (1, out_dim), jnp.float32,
                                    -b_clf_bound, b_clf_bound),
    }


if __name__ == "__main__":
    key = jax.random.PRNGKey(0)
    kx, ky, kp = jax.random.split(key, 3)

    B, C, H, W = 2, 4, 16, 16       # NCHW input
    Z_DIM = 32                      # encoder feature dim
    N_CLASSES = 10                  # classifier out_dim
    DIN = C * H * W

    x = jax.random.normal(kx, (B, C, H, W), jnp.float32)
    y = jax.random.randint(ky, (B,), 0, N_CLASSES, jnp.int32)
    params = init_params(kp, DIN, Z_DIM, N_CLASSES)

    prepare_params, forward = build_online_evaluator(DIN, Z_DIM, N_CLASSES, B)
    padded = jax.block_until_ready(prepare_params(params))

    # warm-up: trace + compile, so the timed call below measures kernel execution only
    jax.block_until_ready(forward(x, y, padded))

    loss, logs = online_evaluator_forward(forward, x, y, padded)
    jax.block_until_ready((loss, logs["online_acc"]))
    print("KERNEL_OK")
</pallas_src>

<mosaic_0001>
module attributes {stable_mosaic.version = 11 : i64} {
  func.func @_online_eval_kernel(%arg0: i32, %arg1: i32, %arg2: memref<8x1024xf32, #tpu.memory_space<vmem>>, %arg3: memref<1024x128xbf16, #tpu.memory_space<vmem>>, %arg4: memref<1x128xf32, #tpu.memory_space<vmem>>, %arg5: memref<128x128xbf16, #tpu.memory_space<vmem>>, %arg6: memref<1x128xf32, #tpu.memory_space<vmem>>, %arg7: memref<8x1xi32, #tpu.memory_space<vmem>>, %arg8: memref<1x8x128xf32, #tpu.memory_space<vmem>>, %arg9: memref<8x128xf32, #tpu.memory_space<vmem>>) attributes {dimension_semantics = [#tpu.dimension_semantics<parallel>, #tpu.dimension_semantics<arbitrary>], iteration_bounds = array<i64: 1, 1>, scalar_prefetch = 0 : i64, scratch_operands = 1 : i64, tpu.core_type = #tpu.core_type<tc>, window_params = [{transform_indices = @transform_0, window_bounds = array<i64: 8, 1024>}, {pipeline_mode = #tpu.pipeline_mode<synchronous>, transform_indices = @transform_1, window_bounds = array<i64: 1024, 128>}, {pipeline_mode = #tpu.pipeline_mode<synchronous>, transform_indices = @transform_2, window_bounds = array<i64: 1, 128>}, {pipeline_mode = #tpu.pipeline_mode<synchronous>, transform_indices = @transform_3, window_bounds = array<i64: 128, 128>}, {pipeline_mode = #tpu.pipeline_mode<synchronous>, transform_indices = @transform_4, window_bounds = array<i64: 1, 128>}, {transform_indices = @transform_5, window_bounds = array<i64: 8, 1>}, {transform_indices = @transform_6, window_bounds = array<i64: 1, 8, 128>}]} {
    %c0 = arith.constant 0 : index
    %c0_0 = arith.constant 0 : index
    %0 = vector.load %arg2[%c0, %c0_0] : memref<8x1024xf32, #tpu.memory_space<vmem>>, vector<8x1024xf32>
    %1 = arith.truncf %0 : vector<8x1024xf32> to vector<8x1024xbf16>
    %c1024_i32 = arith.constant 1024 : i32
    %2 = arith.muli %arg1, %c1024_i32 : i32
    %3 = tpu.assume_multiple %2, 128 : i32
    %4 = arith.index_cast %3 : i32 to index
    %c0_1 = arith.constant 0 : index
    %5 = vector.load %arg3[%4, %c0_1] : memref<1024x128xbf16, #tpu.memory_space<vmem>>, vector<1024x128xbf16>
    %cst = arith.constant dense<0.000000e+00> : vector<8x128xf32>
    %6 = tpu.matmul %1, %5, %cst {dimension_numbers = #tpu.dot_dimension_numbers<[1], [0], [0], [1], [0, 0, 1, 1], [], []>} : vector<8x1024xbf16>, vector<1024x128xbf16>, vector<8x128xf32> -> vector<8x128xf32>
    %c0_i32 = arith.constant 0 : i32
    %7 = arith.cmpi eq, %arg1, %c0_i32 : i32
    %8 = arith.extui %7 : i1 to i32
    %c0_i32_2 = arith.constant 0 : i32
    %9 = arith.cmpi ne, %8, %c0_i32_2 : i32
    scf.if %9 {
      %c0_7 = arith.constant 0 : index
      %c0_8 = arith.constant 0 : index
      %16 = vector.load %arg4[%c0_7, %c0_8] : memref<1x128xf32, #tpu.memory_space<vmem>>, vector<1x128xf32>
      %17 = vector.broadcast %16 : vector<1x128xf32> to vector<8x128xf32>
      %18 = arith.addf %6, %17 : vector<8x128xf32>
      %c0_9 = arith.constant 0 : index
      %c0_10 = arith.constant 0 : index
      %19 = vector.load %arg9[%c0_9, %c0_10] : memref<8x128xf32, #tpu.memory_space<vmem>>, vector<8x128xf32>
      tpu.vector_store %arg9[%c0_9, %c0_10], %18 {strides = array<i32>} : memref<8x128xf32, #tpu.memory_space<vmem>>, vector<8x128xf32>,
    } else {
    }
    %c0_i32_3 = arith.constant 0 : i32
    %10 = arith.cmpi ne, %arg1, %c0_i32_3 : i32
    %11 = arith.extui %10 : i1 to i32
    %c0_i32_4 = arith.constant 0 : i32
    %12 = arith.cmpi ne, %11, %c0_i32_4 : i32
    scf.if %12 {
      %c0_7 = arith.constant 0 : index
      %c0_8 = arith.constant 0 : index
      %16 = vector.load %arg9[%c0_7, %c0_8] : memref<8x128xf32, #tpu.memory_space<vmem>>, vector<8x128xf32>
      %17 = arith.addf %16, %6 : vector<8x128xf32>
      %c0_9 = arith.constant 0 : index
      %c0_10 = arith.constant 0 : index
      %18 = vector.load %arg9[%c0_9, %c0_10] : memref<8x128xf32, #tpu.memory_space<vmem>>, vector<8x128xf32>
      tpu.vector_store %arg9[%c0_9, %c0_10], %17 {strides = array<i32>} : memref<8x128xf32, #tpu.memory_space<vmem>>, vector<8x128xf32>,
    } else {
    }
    %c0_i32_5 = arith.constant 0 : i32
    %13 = arith.cmpi eq, %arg1, %c0_i32_5 : i32
    %14 = arith.extui %13 : i1 to i32
    %c0_i32_6 = arith.constant 0 : i32
    %15 = arith.cmpi ne, %14, %c0_i32_6 : i32
    scf.if %15 {
      %c0_7 = arith.constant 0 : index
      %c0_8 = arith.constant 0 : index
      %16 = vector.load %arg9[%c0_7, %c0_8] : memref<8x128xf32, #tpu.memory_space<vmem>>, vector<8x128xf32>
      %17 = arith.truncf %16 : vector<8x128xf32> to vector<8x128xbf16>
      %c0_9 = arith.constant 0 : index
      %c0_10 = arith.constant 0 : index
      %18 = vector.load %arg5[%c0_9, %c0_10] : memref<128x128xbf16, #tpu.memory_space<vmem>>, vector<128x128xbf16>
      %cst_11 = arith.constant dense<0.000000e+00> : vector<8x128xf32>
      %19 = tpu.matmul %17, %18, %cst_11 {dimension_numbers = #tpu.dot_dimension_numbers<[1], [0], [0], [1], [0, 0, 1, 1], [], []>} : vector<8x128xbf16>, vector<128x128xbf16>, vector<8x128xf32> -> vector<8x128xf32>
      %c0_12 = arith.constant 0 : index
      %c0_13 = arith.constant 0 : index
      %20 = vector.load %arg6[%c0_12, %c0_13] : memref<1x128xf32, #tpu.memory_space<vmem>>, vector<1x128xf32>
      %21 = vector.broadcast %20 : vector<1x128xf32> to vector<8x128xf32>
      %22 = arith.addf %19, %21 : vector<8x128xf32>
      %cst_14 = arith.constant dense<0xFF800000> : vector<8xf32>
      %23 = vector.multi_reduction <maximumf>, %22, %cst_14 [1] : vector<8x128xf32> to vector<8xf32>
      %24 = vector.shape_cast %23 : vector<8xf32> to vector<8x1xf32>
      %25 = vector.broadcast %24 : vector<8x1xf32> to vector<8x128xf32>
      %26 = arith.subf %22, %25 : vector<8x128xf32>
      %27 = math.exp %26 : vector<8x128xf32>
      %cst_15 = arith.constant dense<0.000000e+00> : vector<8xf32>
      %28 = vector.multi_reduction <add>, %27, %cst_15 [1] : vector<8x128xf32> to vector<8xf32>
      %29 = vector.shape_cast %28 : vector<8xf32> to vector<8x1xf32>
      %30 = math.log %29 : vector<8x1xf32>
      %31 = arith.addf %24, %30 : vector<8x1xf32>
      %c0_16 = arith.constant 0 : index
      %c0_17 = arith.constant 0 : index
      %32 = vector.load %arg7[%c0_16, %c0_17] : memref<8x1xi32, #tpu.memory_space<vmem>>, vector<8x1xi32>
      %33 = tpu.iota {dimensions = array<i32: 1>} : vector<8x128xi32>
      %34 = vector.broadcast %32 : vector<8x1xi32> to vector<8x128xi32>
      %35 = arith.cmpi eq, %33, %34 : vector<8x128xi32>
      %cst_18 = arith.constant 0.000000e+00 : f32
      %36 = vector.broadcast %cst_18 : f32 to vector<8x128xf32>
      %37 = arith.select %35, %22, %36 : vector<8x128xi1>, vector<8x128xf32>
      %cst_19 = arith.constant dense<0.000000e+00> : vector<8xf32>
      %38 = vector.multi_reduction <add>, %37, %cst_19 [1] : vector<8x128xf32> to vector<8xf32>
      %39 = vector.shape_cast %38 : vector<8xf32> to vector<8x1xf32>
      %40 = arith.subf %31, %39 : vector<8x1xf32>
      %41 = vector.broadcast %24 : vector<8x1xf32> to vector<8x128xf32>
      %42 = arith.cmpf oeq, %22, %41 : vector<8x128xf32>
      %c128_i32 = arith.constant 128 : i32
      %43 = vector.broadcast %c128_i32 : i32 to vector<8x128xi32>
      %44 = arith.select %42, %33, %43 : vector<8x128xi1>, vector<8x128xi32>
      %cst_20 = arith.constant dense<2147483647> : vector<8xi32>
      %45 = vector.multi_reduction <minsi>, %44, %cst_20 [1] : vector<8x128xi32> to vector<8xi32>
      %46 = vector.shape_cast %45 : vector<8xi32> to vector<8x1xi32>
      %47 = arith.cmpi eq, %46, %32 : vector<8x1xi32>
      %48 = arith.extui %47 : vector<8x1xi1> to vector<8x1xi32>
      %49 = arith.sitofp %48 : vector<8x1xi32> to vector<8x1xf32>
      %50 = tpu.iota {dimensions = array<i32: 0>} : vector<8x1xi32>
      %c8_i32 = arith.constant 8 : i32
      %51 = arith.muli %arg0, %c8_i32 : i32
      %52 = vector.broadcast %51 : i32 to vector<8x1xi32>
      %53 = arith.addi %50, %52 : vector<8x1xi32>
      %c2_i32 = arith.constant 2 : i32
      %54 = vector.broadcast %c2_i32 : i32 to vector<8x1xi32>
      %55 = arith.cmpi slt, %53, %54 : vector<8x1xi32>
      %56 = arith.extui %55 : vector<8x1xi1> to vector<8x1xi32>
      %57 = arith.sitofp %56 : vector<8x1xi32> to vector<8x1xf32>
      %58 = arith.mulf %40, %57 : vector<8x1xf32>
      %59 = vector.shape_cast %58 : vector<8x1xf32> to vector<1x8x1xf32>
      %cst_21 = arith.constant dense<0.000000e+00> : vector<1xf32>
      %60 = vector.multi_reduction <add>, %59, %cst_21 [1, 2] : vector<1x8x1xf32> to vector<1xf32>
      %61 = vector.shape_cast %60 : vector<1xf32> to vector<1x1x1xf32>
      %62 = vector.extract %61[0, 0, 0] : f32 from vector<1x1x1xf32>
      %63 = arith.mulf %49, %57 : vector<8x1xf32>
      %64 = vector.shape_cast %63 : vector<8x1xf32> to vector<1x8x1xf32>
      %cst_22 = arith.constant dense<0.000000e+00> : vector<1xf32>
      %65 = vector.multi_reduction <add>, %64, %cst_22 [1, 2] : vector<1x8x1xf32> to vector<1xf32>
      %66 = vector.shape_cast %65 : vector<1xf32> to vector<1x1x1xf32>
      %67 = vector.extract %66[0, 0, 0] : f32 from vector<1x1x1xf32>
      %68 = tpu.iota {dimensions = array<i32: 0>} : vector<8x128xi32>
      %c0_i32_23 = arith.constant 0 : i32
      %69 = vector.broadcast %c0_i32_23 : i32 to vector<8x128xi32>
      %70 = arith.cmpi eq, %68, %69 : vector<8x128xi32>
      %c1_i32 = arith.constant 1 : i32
      %71 = vector.broadcast %c1_i32 : i32 to vector<8x128xi32>
      %72 = arith.cmpi eq, %68, %71 : vector<8x128xi32>
      %cst_24 = arith.constant 0.000000e+00 : f32
      %73 = vector.broadcast %67 : f32 to vector<8x128xf32>
      %74 = vector.broadcast %cst_24 : f32 to vector<8x128xf32>
      %75 = arith.select %72, %73, %74 : vector<8x128xi1>, vector<8x128xf32>
      %76 = vector.broadcast %62 : f32 to vector<8x128xf32>
      %77 = arith.select %70, %76, %75 : vector<8x128xi1>, vector<8x128xf32>
      %78 = vector.shape_cast %77 : vector<8x128xf32> to vector<1x8x128xf32>
      %c0_25 = arith.constant 0 : index
      %c0_26 = arith.constant 0 : index
      %c0_27 = arith.constant 0 : index
      %79 = vector.load %arg8[%c0_25, %c0_26, %c0_27] : memref<1x8x128xf32, #tpu.memory_space<vmem>>, vector<1x8x128xf32>
      tpu.vector_store %arg8[%c0_25, %c0_26, %c0_27], %78 {strides = array<i32>} : memref<1x8x128xf32, #tpu.memory_space<vmem>>, vector<1x8x128xf32>,
    } else {
    }
    return
  }
  func.func @transform_0(%arg0: i32, %arg1: i32) -> (i32, i32) {
    %c0_i32 = arith.constant 0 : i32
    return %arg0, %arg1 : i32, i32
  }
  func.func @transform_1(%arg0: i32, %arg1: i32) -> (i32, i32) {
    %c0_i32 = arith.constant 0 : i32
    %c0_i32_0 = arith.constant 0 : i32
    %c0_i32_1 = arith.constant 0 : i32
    return %c0_i32, %c0_i32_0 : i32, i32
  }
  func.func @transform_2(%arg0: i32, %arg1: i32) -> (i32, i32) {
    %c0_i32 = arith.constant 0 : i32
    %c0_i32_0 = arith.constant 0 : i32
    %c0_i32_1 = arith.constant 0 : i32
    return %c0_i32, %c0_i32_0 : i32, i32
  }
  func.func @transform_3(%arg0: i32, %arg1: i32) -> (i32, i32) {
    %c0_i32 = arith.constant 0 : i32
    %c0_i32_0 = arith.constant 0 : i32
    %c0_i32_1 = arith.constant 0 : i32
    return %c0_i32, %c0_i32_0 : i32, i32
  }
  func.func @transform_4(%arg0: i32, %arg1: i32) -> (i32, i32) {
    %c0_i32 = arith.constant 0 : i32
    %c0_i32_0 = arith.constant 0 : i32
    %c0_i32_1 = arith.constant 0 : i32
    return %c0_i32, %c0_i32_0 : i32, i32
  }
  func.func @transform_5(%arg0: i32, %arg1: i32) -> (i32, i32) {
    %c0_i32 = arith.constant 0 : i32
    %c0_i32_0 = arith.constant 0 : i32
    return %arg0, %c0_i32 : i32, i32
  }
  func.func @transform_6(%arg0: i32, %arg1: i32) -> (i32, i32, i32) {
    %c0_i32 = arith.constant 0 : i32
    %c0_i32_0 = arith.constant 0 : i32
    %c0_i32_1 = arith.constant 0 : i32
    return %arg0, %c0_i32, %c0_i32_0 : i32, i32, i32
  }
}

</mosaic_0001>

<bundles_post_ra>
// kernel: forward.1
= control target key start
LH: loop header
LB: loop body
LE: loop exit
PB: predicated region body
PF: predicated region fallthrough
CT: control target
= control target key end

     0   :  { %11 = vsyncpa [#allocation4], 0  ;;  %s1269_s24 = smov [#allocation3]   ;;  %s1270_s26 = smov 64   ;;  %s1376_s0 = inlined_call_operand.vmem [shape: f32[8,1024], index: 0, kind: input, shape index: {}]   ;;  %s1377_s1 = inlined_call_operand.hbm [shape: bf16[1024,128], index: 1, kind: input, shape index: {}]   ;;  %s1378_s2 = inlined_call_operand.vmem [shape: f32[1,128], index: 2, kind: input, shape index: {}]   ;;  %s1379_s3 = inlined_call_operand.vmem [shape: bf16[128,128], index: 3, kind: input, shape index: {}]   ;;  %s1380_s4 = inlined_call_operand.vmem [shape: f32[1,128], index: 4, kind: input, shape index: {}]   ;;  %s1381_s5 = inlined_call_operand.vmem [shape: s32[8,1], index: 5, kind: input, shape index: {}]   ;;  %s1382_s6 = inlined_call_operand.vmem [shape: f32[1,8,128], index: 6, kind: output, shape index: {}]  }
   0x1   :  { %s18_s23 = sshll.u32 %s1377_s1, 4  ;;  %s20_s25 = sshll.u32 %s1269_s24, 4  ;;  %s19_s23 = int_to_ptr.hbm [resolvable:$true] %s18_s23  ;;  %s21_s25 = int_to_ptr.vmem [resolvable:$true] %s20_s25 }
   0x2   :  { %s1271_s27 = smov 4  }
   0x3   :  { %26 = dma.hbm_to_vmem [thread:$0]  %s19_s23, 8192, %s21_s25, [#allocation4], %s1270_s26, %s1270_s26, %s1271_s27  }
   0x4   :  { %1267 = dma.done.wait [#allocation4], 8192  }
   0x5   :  { %1268 = vsyncadd [#allocation4], 4294959104  ;;  %v1161_v0 = vld [vmem:[#allocation3 + $0x38] sm:$0xff]  ;;  %v1160_v4 = vld [vmem:[#allocation3 + $0x30] sm:$0xff]  ;;  %vm828_vm5 = vcmask 7168  }
   0x6   :  { %v1169_v1 = vld [vmem:[#allocation3 + $0x78] sm:$0xff]  ;;  %572 = vmatpush.bf16.msra.mxu0 %v1161_v0  ;;  %v1168_v5 = vld [vmem:[#allocation3 + $0x70] sm:$0xff]  ;;  %v1159_v8 = vld [vmem:[#allocation3 + $0x28] sm:$0xff] }
   0x7   :  { %v1177_v2 = vld [vmem:[#allocation3 + $0xb8] sm:$0xff]  ;;  %585 = vmatpush.bf16.msra.mxu1 %v1169_v1  ;;  %v1176_v6 = vld [vmem:[#allocation3 + $0xb0] sm:$0xff]  ;;  %v1167_v9 = vld [vmem:[#allocation3 + $0x68] sm:$0xff] }
   0x8   :  { %v1185_v3 = vld [vmem:[#allocation3 + $0xf8] sm:$0xff]  ;;  %598 = vmatpush.bf16.msra.mxu2 %v1177_v2  ;;  %v1184_v7 = vld [vmem:[#allocation3 + $0xf0] sm:$0xff]  ;;  %v1175_v10 = vld [vmem:[#allocation3 + $0xa8] sm:$0xff] }
   0x9   :  { %611 = vmatpush.bf16.msra.mxu3 %v1185_v3  ;;  %v1183_v11 = vld [vmem:[#allocation3 + $0xe8] sm:$0xff]  ;;  %v1158_v12 = vld [vmem:[#allocation3 + $0x20] sm:$0xff]  ;;  %v1157_v16 = vld [vmem:[#allocation3 + $0x18] sm:$0xff] }
   0xa   :  { %573 = vmatpush.bf16.msra.mxu0 %v1160_v4  ;;  %v1166_v13 = vld [vmem:[#allocation3 + $0x60] sm:$0xff]  ;;  %v1165_v17 = vld [vmem:[#allocation3 + $0x58] sm:$0xff]  ;;  %v1156_v20 = vld [vmem:[#allocation3 + $0x10] sm:$0xff] }
   0xb   :  { %586 = vmatpush.bf16.msra.mxu1 %v1168_v5  ;;  %v1174_v14 = vld [vmem:[#allocation3 + $0xa0] sm:$0xff]  ;;  %v1173_v18 = vld [vmem:[#allocation3 + $0x98] sm:$0xff]  ;;  %v1164_v21 = vld [vmem:[#allocation3 + $0x50] sm:$0xff] }
   0xc   :  { %599 = vmatpush.bf16.msra.mxu2 %v1176_v6  ;;  %v1182_v15 = vld [vmem:[#allocation3 + $0xe0] sm:$0xff]  ;;  %v1181_v19 = vld [vmem:[#allocation3 + $0xd8] sm:$0xff]  ;;  %v1172_v22 = vld [vmem:[#allocation3 + $0x90] sm:$0xff] }
   0xd   :  { %612 = vmatpush.bf16.msra.mxu3 %v1184_v7  ;;  %v1180_v23 = vld [vmem:[#allocation3 + $0xd0] sm:$0xff]  ;;  %v1155_v24 = vld [vmem:[#allocation3 + $0x8] sm:$0xff]  ;;  %v1154_v28 = vld [vmem:[#allocation3] sm:$0xff] }
   0xe   :  { %574 = vmatpush.bf16.msra.mxu0 %v1159_v8  ;;  %v1163_v25 = vld [vmem:[#allocation3 + $0x48] sm:$0xff]  ;;  %v1162_v29 = vld [vmem:[#allocation3 + $0x40] sm:$0xff]  ;;  %v1193_v32 = vld [vmem:[#allocation3 + $0x138] sm:$0xff] }
   0xf   :  { %587 = vmatpush.bf16.msra.mxu1 %v1167_v9  ;;  %v1171_v26 = vld [vmem:[#allocation3 + $0x88] sm:$0xff]  ;;  %v1170_v30 = vld [vmem:[#allocation3 + $0x80] sm:$0xff]  ;;  %v41_v33 = vld [vmem:[%s1376_s0 + $0x10] sm:$0xff] }
  0x10   :  { %600 = vmatpush.bf16.msra.mxu2 %v1175_v10  ;;  %v1179_v27 = vld [vmem:[#allocation3 + $0xc8] sm:$0xff]  ;;  %v1178_v31 = vld [vmem:[#allocation3 + $0xc0] sm:$0xff]  ;;  %v1201_v35 = vld [vmem:[#allocation3 + $0x178] sm:$0xff]  ;;  %v49_v40 = vpack.c.bf16 %v41_v33, %v41_v33 }
  0x11   :  { %613 = vmatpush.bf16.msra.mxu3 %v1183_v11  ;;  %v39_v34 = vld [vmem:[%s1376_s0] sm:$0xff]  ;;  %v42_v36 = vld [vmem:[%s1376_s0 + $0x18] sm:$0xff]  ;;  %v40_v37 = vld [vmem:[%s1376_s0 + $0x8] sm:$0xff] }
  0x12   :  { %575 = vmatpush.bf16.msra.mxu0 %v1158_v12  ;;  %v1209_v38 = vld [vmem:[#allocation3 + $0x1b8] sm:$0xff]  ;;  %v47_v41 = vpack.c.bf16 %v39_v34, %v39_v34  ;;  %v50_v42 = vpack.c.bf16 %v42_v36, %v42_v36  ;;  %v48_v43 = vpack.c.bf16 %v40_v37, %v40_v37  ;;  %v1192_v44 = vld [vmem:[#allocation3 + $0x130] sm:$0xff]  ;;  %v1191_v48 = vld [vmem:[#allocation3 + $0x128] sm:$0xff] }
  0x13   :  { %588 = vmatpush.bf16.msra.mxu1 %v1166_v13  ;;  %v1217_v39 = vld [vmem:[#allocation3 + $0x1f8] sm:$0xff]  ;;  %v1200_v45 = vld [vmem:[#allocation3 + $0x170] sm:$0xff]  ;;  %v1199_v49 = vld [vmem:[#allocation3 + $0x168] sm:$0xff] }
  0x14   :  { %601 = vmatpush.bf16.msra.mxu2 %v1174_v14  ;;  %v1208_v46 = vld [vmem:[#allocation3 + $0x1b0] sm:$0xff]  ;;  %v1207_v50 = vld [vmem:[#allocation3 + $0x1a8] sm:$0xff]  ;;  %v1190_v52 = vld [vmem:[#allocation3 + $0x120] sm:$0xff] }
  0x15   :  { %614 = vmatpush.bf16.msra.mxu3 %v1182_v15  ;;  %v1216_v47 = vld [vmem:[#allocation3 + $0x1f0] sm:$0xff]  ;;  %v1215_v51 = vld [vmem:[#allocation3 + $0x1e8] sm:$0xff]  ;;  %v1198_v53 = vld [vmem:[#allocation3 + $0x160] sm:$0xff] }
  0x16   :  { %576 = vmatpush.bf16.msra.mxu0 %v1157_v16  ;;  %v1206_v54 = vld [vmem:[#allocation3 + $0x1a0] sm:$0xff]  ;;  %v1189_v56 = vld [vmem:[#allocation3 + $0x118] sm:$0xff]  ;;  %v1188_v60 = vld [vmem:[#allocation3 + $0x110] sm:$0xff] }
  0x17   :  { %589 = vmatpush.bf16.msra.mxu1 %v1165_v17  ;;  %v1214_v55 = vld [vmem:[#allocation3 + $0x1e0] sm:$0xff]  ;;  %v1197_v57 = vld [vmem:[#allocation3 + $0x158] sm:$0xff]  ;;  %v1196_v61 = vld [vmem:[#allocation3 + $0x150] sm:$0xff] }
  0x18   :  { %602 = vmatpush.bf16.msra.mxu2 %v1173_v18  ;;  %v1205_v58 = vld [vmem:[#allocation3 + $0x198] sm:$0xff]  ;;  %v1204_v62 = vld [vmem:[#allocation3 + $0x190] sm:$0xff]  ;;  %v1187_v0 = vld [vmem:[#allocation3 + $0x108] sm:$0xff] }
  0x19   :  { %615 = vmatpush.bf16.msra.mxu3 %v1181_v19  ;;  %v1213_v59 = vld [vmem:[#allocation3 + $0x1d8] sm:$0xff]  ;;  %v1212_v63 = vld [vmem:[#allocation3 + $0x1d0] sm:$0xff]  ;;  %v1195_v1 = vld [vmem:[#allocation3 + $0x148] sm:$0xff] }
  0x1a   :  { %577 = vmatpush.bf16.msra.mxu0 %v1156_v20  ;;  %v1203_v2 = vld [vmem:[#allocation3 + $0x188] sm:$0xff]  ;;  %v1186_v4 = vld [vmem:[#allocation3 + $0x100] sm:$0xff]  ;;  %v45_v10 = vld [vmem:[%s1376_s0 + $0x30] sm:$0xff] }
  0x1b   :  { %590 = vmatpush.bf16.msra.mxu1 %v1164_v21  ;;  %v1211_v3 = vld [vmem:[#allocation3 + $0x1c8] sm:$0xff]  ;;  %v1194_v5 = vld [vmem:[#allocation3 + $0x140] sm:$0xff]  ;;  %v46_v11 = vld [vmem:[%s1376_s0 + $0x38] sm:$0xff]  ;;  %v53_v14 = vpack.c.bf16 %v45_v10, %v45_v10 }
  0x1c   :  { %603 = vmatpush.bf16.msra.mxu2 %v1172_v22  ;;  %v1202_v6 = vld [vmem:[#allocation3 + $0x180] sm:$0xff]  ;;  %v44_v8 = vld [vmem:[%s1376_s0 + $0x28] sm:$0xff]  ;;  %v54_v15 = vpack.c.bf16 %v46_v11, %v46_v11  ;;  %v1225_v16 = vld [vmem:[%s1379_s3 + $0x38] sm:$0xff] }
  0x1d   :  { %616 = vmatpush.bf16.msra.mxu3 %v1180_v23  ;;  %v43_v7 = vld [vmem:[%s1376_s0 + $0x20] sm:$0xff]  ;;  %v52_v13 = vpack.c.bf16 %v44_v8, %v44_v8  ;;  %v1224_v17 = vld [vmem:[%s1379_s3 + $0x30] sm:$0xff]  ;;  %v1223_v18 = vld [vmem:[%s1379_s3 + $0x28] sm:$0xff] }
  0x1e   :  { %578 = vmatpush.bf16.msra.mxu0 %v1155_v24  ;;  %v1210_v9 = vld [vmem:[#allocation3 + $0x1c0] sm:$0xff]  ;;  %v51_v12 = vpack.c.bf16 %v43_v7, %v43_v7  ;;  %v1221_v20 = vld [vmem:[%s1379_s3 + $0x18] sm:$0xff]  ;;  %v1220_v22 = vld [vmem:[%s1379_s3 + $0x10] sm:$0xff] }
  0x1f   :  { %591 = vmatpush.bf16.msra.mxu1 %v1163_v25  ;;  %v1222_v19 = vld [vmem:[%s1379_s3 + $0x20] sm:$0xff]  ;;  %v1219_v24 = vld [vmem:[%s1379_s3 + $0x8] sm:$0xff] }
  0x20   :  { %604 = vmatpush.bf16.msra.mxu2 %v1171_v26 }
  0x21   :  { %617 = vmatpush.bf16.msra.mxu3 %v1179_v27 }
  0x22   :  { %579 = vmatpush.bf16.msra.mxu0 %v1154_v28  ;;  %v1218_v28 = vld [vmem:[%s1379_s3] sm:$0xff] }
  0x23   :  { %592 = vmatpush.bf16.msra.mxu1 %v1162_v29 }
  0x24   :  { %605 = vmatpush.bf16.msra.mxu2 %v1170_v30  ;;  %v1363_v30 = vld [vmem:[%s1381_s5] sm:$0xff] }
  0x25   :  { %618 = vmatpush.bf16.msra.mxu3 %v1178_v31  ;;  %580 = vmatmul.bf16.vlgmr.msra.gmra.mxu0 %v47_v41 }
  0x26   :  { %624 = vmatpush.bf16.msrb.mxu0 %v1193_v32  ;;  %593 = vmatmul.bf16.vlgmr.msra.gmra.mxu1 %v48_v43  ;;  %v1272_v32 = vmov 0  }
  0x27   :  { %637 = vmatpush.bf16.msrb.mxu1 %v1201_v35  ;;  %606 = vmatmul.bf16.vlgmr.msra.gmra.mxu2 %v49_v40 }
  0x28   :  { %650 = vmatpush.bf16.msrb.mxu2 %v1209_v38  ;;  %619 = vmatmul.bf16.vlgmr.msra.gmra.mxu3 %v50_v42 }
  0x29   :  { %663 = vmatpush.bf16.msrb.mxu3 %v1217_v39  ;;  %1235 = vset.pattern.permute.xlu1 %v1272_v32 }
  0x2a   :  { %625 = vmatpush.bf16.msrb.mxu0 %v1192_v44  ;;  %1236 = vset.pattern.permute.xlu0 %v1272_v32  ;;  %v1237_v44 = vld [vmem:[%s1378_s2] ss:$0 sm:$0xff] }
  0x2b   :  { %638 = vmatpush.bf16.msrb.mxu1 %v1200_v45  ;;  %793 = vperm.xlu1 %1235, %v1363_v30  }
  0x2c   :  { %651 = vmatpush.bf16.msrb.mxu2 %v1208_v46 }
  0x2d   :  { %664 = vmatpush.bf16.msrb.mxu3 %v1216_v47 }
  0x2e   :  { %626 = vmatpush.bf16.msrb.mxu0 %v1191_v48 }
  0x2f   :  { %639 = vmatpush.bf16.msrb.mxu1 %v1199_v49 }
  0x30   :  { %652 = vmatpush.bf16.msrb.mxu2 %v1207_v50 }
  0x31   :  { %665 = vmatpush.bf16.msrb.mxu3 %v1215_v51 }
  0x32   :  { %627 = vmatpush.bf16.msrb.mxu0 %v1190_v52  ;;  %v1238_v52 = vld [vmem:[%s1380_s4] ss:$0 sm:$0xff] }
  0x33   :  { %640 = vmatpush.bf16.msrb.mxu1 %v1198_v53 }
  0x34   :  { %653 = vmatpush.bf16.msrb.mxu2 %v1206_v54 }
  0x35   :  { %666 = vmatpush.bf16.msrb.mxu3 %v1214_v55 }
  0x36   :  { %628 = vmatpush.bf16.msrb.mxu0 %v1189_v56  ;;  %v790_v56 = vlaneseq }
  0x37   :  { %641 = vmatpush.bf16.msrb.mxu1 %v1197_v57 }
  0x38   :  { %654 = vmatpush.bf16.msrb.mxu2 %v1205_v58  ;;  %v791_v57 = vand.u32 127, %v790_v56  ;;  %v820_v8 = vshrl.u32 %v790_v56, 7 }
  0x39   :  { %667 = vmatpush.bf16.msrb.mxu3 %v1213_v59 }
  0x3a   :  { %629 = vmatpush.bf16.msrb.mxu0 %v1188_v60  ;;  %vm824_vm3 = vcmp.lt.s32.totalorder %v820_v8, 2  ;;  %vm851_vm6 = vcmp.eq.s32.totalorder %v820_v8, 1  ;;  %vm850_vm7 = vcmp.eq.s32.totalorder %v820_v8, 0 }
  0x3b   :  { %642 = vmatpush.bf16.msrb.mxu1 %v1196_v61 }
  0x3c   :  { %655 = vmatpush.bf16.msrb.mxu2 %v1204_v62 }
  0x3d   :  { %668 = vmatpush.bf16.msrb.mxu3 %v1212_v63 }
  0x3e   :  { %630 = vmatpush.bf16.msrb.mxu0 %v1187_v0 }
  0x3f   :  { %643 = vmatpush.bf16.msrb.mxu1 %v1195_v1 }
  0x40   :  { %656 = vmatpush.bf16.msrb.mxu2 %v1203_v2 }
  0x41   :  { %669 = vmatpush.bf16.msrb.mxu3 %v1211_v3 }
  0x42   :  { %631 = vmatpush.bf16.msrb.mxu0 %v1186_v4 }
  0x43   :  { %644 = vmatpush.bf16.msrb.mxu1 %v1194_v5 }
  0x44   :  { %657 = vmatpush.bf16.msrb.mxu2 %v1202_v6 }
  0x45   :  { %670 = vmatpush.bf16.msrb.mxu3 %v1210_v9  ;;  %632 = vmatmul.bf16.vlgmr.msrb.gmra.mxu0 %v51_v12 }
  0x46   :  { %645 = vmatmul.bf16.vlgmr.msrb.gmra.mxu1 %v52_v13  ;;  %766 = vmatpush.bf16.msra.mxu0 %v1225_v16  ;;  %v1273_v16 = vmov 0.0  }
  0x47   :  { %658 = vmatmul.bf16.vlgmr.msrb.gmra.mxu2 %v53_v14 }
  0x48   :  { %671 = vmatmul.bf16.vlgmr.msrb.gmra.mxu3 %v54_v15 }
  0x4a   :  { %767 = vmatpush.bf16.msra.mxu0 %v1224_v17  ;;  %v1153_v17 = vsel %vm824_vm3, 1.0, %v1273_v16 }
  0x4e   :  { %768 = vmatpush.bf16.msra.mxu0 %v1223_v18 }
  0x52   :  { %769 = vmatpush.bf16.msra.mxu0 %v1222_v19 }
  0x56   :  { %770 = vmatpush.bf16.msra.mxu0 %v1221_v20 }
  0x5a   :  { %771 = vmatpush.bf16.msra.mxu0 %v1220_v22 }
  0x5e   :  { %772 = vmatpush.bf16.msra.mxu0 %v1219_v24 }
  0x62   :  { %773 = vmatpush.bf16.msra.mxu0 %v1218_v28 }
  0x9d   :  { %v794_v5 = vpop.permute.xlu1 %793 }
  0x9e   :  { %vm795_vm2 = vcmp.eq.s32.totalorder %v791_v57, %v794_v5 }
  0xa2   :  { %v581_v21 = vpop.f32.mrf.mxu0 }
  0xa3   :  { %v594_v23 = vpop.f32.mrf.mxu1 }
  0xa4   :  { %v595_v34 = vadd.f32 %v594_v23, %v581_v21 }
  0xaa   :  { %v607_v25 = vpop.f32.mrf.mxu2  ;;  %v583_v27 = vpop.f32.mrf.mxu0 }
  0xab   :  { %v620_v26 = vpop.f32.mrf.mxu3  ;;  %v596_v29 = vpop.f32.mrf.mxu1  ;;  %v608_v35 = vadd.f32 %v607_v25, %v595_v34 }
  0xad   :  { %v621_v36 = vadd.f32 %v620_v26, %v608_v35 }
  0xb2   :  { %v609_v31 = vpop.f32.mrf.mxu2 }
  0xb3   :  { %v622_v33 = vpop.f32.mrf.mxu3 }
  0xc2   :  { %v633_v37 = vpop.f32.mrf.mxu0 }
  0xc3   :  { %v646_v38 = vpop.f32.mrf.mxu1  ;;  %v634_v39 = vadd.f32 %v633_v37, %v621_v36 }
  0xc5   :  { %v647_v40 = vadd.f32 %v646_v38, %v634_v39 }
  0xca   :  { %v659_v41 = vpop.f32.mrf.mxu2  ;;  %v635_v45 = vpop.f32.mrf.mxu0 }
  0xcb   :  { %v672_v42 = vpop.f32.mrf.mxu3  ;;  %v660_v43 = vadd.f32 %v659_v41, %v647_v40  ;;  %v648_v46 = vpop.f32.mrf.mxu1 }
  0xcd   :  { %v673_v47 = vadd.f32 %v672_v42, %v660_v43 }
  0xcf   :  { %v684_v48 = vadd.f32 %v1237_v44, %v673_v47 }
  0xd1   :  { %v697_v49 = vpack.c.bf16 %v684_v48, %v684_v48 }
  0xd2   :  { %v661_v50 = vpop.f32.mrf.mxu2 }
  0xd3   :  { %v674_v51 = vpop.f32.mrf.mxu3  ;;  %774 = vmatmul.bf16.vlgmr.msra.gmra.mxu0 %v697_v49 }
 0x150   :  { %v775_v53 = vpop.f32.mrf.mxu0 }
 0x151   :  { %v776_v54 = vadd.f32 %v1238_v52, %v775_v53 }
 0x153   :  { %779 = vmax.xlane.f32.xlu0 %v776_v54  ;;  %v796_v6 = vsel %vm795_vm2, %v776_v54, 0.0 }
 0x158   :  { %v777_v55 = vpop.f32.mrf.mxu0 }
 0x1c6   :  { %v780_v58 = vpop.xlane.xlu0 %779 }
 0x1c7   :  { %v781_v59 = vsub.f32 %v776_v54, %v780_v58  ;;  %vm800_vm0 = vcmp.eq.f32.partialorder %v776_v54, %v780_v58 }
 0x1c8   :  { %v801_v60 = vsel %vm800_vm0, %v791_v57, 128 }
 0x1c9   :  { %v782_v61 = vmul.f32 1.442695, %v781_v59  ;;  %v803_v62 = vshra.s32 %v801_v60, 16  ;;  %v802_v1 = vand.u32 65535, %v801_v60 }
 0x1cb   :  { %1239 = vpow2.f32 %v782_v61  ;;  %v805_v63 = vcvt.s32.f32 %v803_v62  ;;  %v804_v3 = vcvt.s32.f32 %v802_v1 }
 0x1cd   :  { %806 = vmin.xlane.f32.xlu0 %v805_v63 }
 0x1d1   :  { %v1240_v0 = vpop.eup %1239 }
 0x1d2   :  { %784 = vadd.xlane.f32.xlu1 %v1240_v0 }
 0x240   :  { %v807_v2 = vpop.xlane.xlu0 %806 }
 0x241   :  { %vm808_vm1 = vcmp.eq.f32.partialorder %v805_v63, %v807_v2  ;;  %v813_v9 = vcvt.f32.s32 %v807_v2 }
 0x242   :  { %v809_v4 = vsel %vm808_vm1, %v804_v3, inf }
 0x243   :  { %810 = vmin.xlane.f32.xlu2 %v809_v4  ;;  %v814_v12 = vshll.u32 %v813_v9, 16 }
 0x245   :  { %v785_v7 = vpop.xlane.xlu1 %784 }
 0x246   :  { %1241 = vlog2.f32 %v785_v7 }
 0x24b   :  { %797 = vadd.xlane.f32.xlu2 %v796_v6 }
 0x24c   :  { %v1242_v10 = vpop.eup %1241 }
 0x24d   :  { %v787_v14 = vmul.f32 0.6931472, %v1242_v10 }
 0x24f   :  { %v788_v19 = vadd.f32 %v787_v14, %v780_v58 }
 0x2b6   :  { %v811_v11 = vpop.xlane.xlu2 %810 }
 0x2b7   :  { %v812_v13 = vcvt.f32.s32 %v811_v11 }
 0x2b9   :  { %v815_v15 = vadd.s32 %v814_v12, %v812_v13 }
 0x2bb   :  { %vm816_vm4 = vcmp.eq.s32.totalorder %v815_v15, %v1363_v30 }
 0x2bc   :  { %v1152_v18 = vsel %vm816_vm4, 1.0, %v1273_v16 }
 0x2bd   :  { %v839_v20 = vmul.f32 %v1153_v17, %v1152_v18 }
 0x2be   :  { %v798_v21 = vpop.xlane.xlu2 %797 }
 0x2bf   :  { %v799_v22 = vsub.f32 %v788_v19, %v798_v21  ;;  %v840_v23 = vsel %vm828_vm5, %v839_v20, 0.0 }
 0x2c0   :  { %841 = vadd.xlane.f32.xlu2 %v840_v23 }
 0x2c1   :  { %v827_v24 = vmul.f32 %v1153_v17, %v799_v22 }
 0x2c3   :  { %v829_v25 = vsel %vm828_vm5, %v827_v24, 0.0 }
 0x2c4   :  { %830 = vadd.xlane.f32.xlu0 %v829_v25 }
 0x333   :  { %v842_v26 = vpop.xlane.xlu2 %841 }
 0x334   :  { %v843_v27 = vrot.slane %v842_v26, 4 }
 0x336   :  { %v844_v28 = vadd.f32 %v843_v27, %v842_v26 }
 0x337   :  { %v831_v29 = vpop.xlane.xlu0 %830 }
 0x338   :  { %v845_v31 = vrot.slane %v844_v28, 2  ;;  %v832_v32 = vrot.slane %v831_v29, 4 }
 0x33a   :  { %v833_v33 = vadd.f32 %v832_v32, %v831_v29  ;;  %v846_v34 = vadd.f32 %v845_v31, %v844_v28 }
 0x33c   :  { %v834_v30 = vrot.slane %v833_v33, 2  ;;  %v847_v36 = vrot.slane %v846_v34, 1 }
 0x33e   :  { %v835_v35 = vadd.f32 %v834_v30, %v833_v33  ;;  %v848_v39 = vadd.f32 %v847_v36, %v846_v34 }
 0x340   :  { %v836_v37 = vrot.slane %v835_v35, 1 }
 0x342   :  { %v837_v38 = vadd.f32 %v836_v37, %v835_v35 }
 0x344   :  { %1226 = vpush %v837_v38 }
 0x345   :  { %1228 = vpush %v848_v39 }
 0x375   :  { %s1227_s2 = spop %1226 }
 0x376   :  { %v854_v40 = vstv %s1227_s2  ;;  %s1229_s4 = spop %1228 }
 0x377   :  { %v852_v41 = vstv %s1229_s4 }
 0x378   :  { %v853_v42 = vsel %vm851_vm6, %v852_v41, 0.0 }
 0x379   :  { %v855_v43 = vsel %vm850_vm7, %v854_v40, %v853_v42 }
 0x37a   :  { %856 = vst [vmem:[%s1382_s6] sm:$0xff] %v855_v43 }
 0x37b   :  { %861 = vsyncpa [#allocation4], 1 }

</bundles_post_ra>
